<compile_context>
chip_gen: v6e
topology: v6e:2x2x1
jax: 0.10.0
libtpu: 0.0.40
codegen_flags: <defaults>
</compile_context>

<pallas_src>
import jax
import jax.numpy as jnp
from jax.experimental import pallas as pl
from jax.experimental.pallas import tpu as pltpu


def _round_up(x, m):
    return (x + m - 1) // m * m


def _conv_mm_kernel(w_ref, a_ref, b_ref, o_ref, acc_ref):
    # w_ref: (t_co, t_k), a_ref: (t_k, t_hw), b_ref: (t_co, 1),
    # o_ref: (t_co, t_hw), acc_ref: (t_co, t_hw) f32 accumulator.
    k = pl.program_id(3)

    @pl.when(k == 0)
    def _init():
        acc_ref[...] = jnp.zeros_like(acc_ref)

    acc_ref[...] += jnp.dot(w_ref[...], a_ref[...],
                            preferred_element_type=jnp.float32)

    @pl.when(k == pl.num_programs(3) - 1)
    def _finalize():
        # bias added exactly once, on the last K step (lane-broadcast).
        o_ref[...] = (acc_ref[...] + b_ref[...]).astype(o_ref.dtype)


def my_conv2d(x, weight, bias, kernel_size=1):
    """Forward of nn.Conv2d(Cin, Cout, kernel_size, padding=(k-1)//2).

    x:      (N, Cin, H, W)  float32 (NCHW, matching PyTorch)
    weight: (Cout, Cin, kh, kw)
    bias:   (Cout,)
    returns (N, Cout, H, W)
    """
    N, Cin, H, W = x.shape
    Cout = weight.shape[0]
    if kernel_size % 2 == 0:
        # PyTorch with padding=(k-1)//2 and even k changes the spatial size;
        # this kernel implements the "same"-output (odd k) case only.
        raise NotImplementedError("my_conv2d supports odd kernel_size only")
    kh = kw = kernel_size
    pad = (kernel_size - 1) // 2
    HW = H * W
    K = kh * kw * Cin

    if kernel_size == 1:
        # 1x1 conv: per-pixel channel matmul directly on the NCHW layout.
        A = x.reshape(N, Cin, HW)                               # (N, K, HW)
        Wm = weight.reshape(Cout, Cin)                          # (Cout, K)
    else:
        # TODO(synk): replace this HBM im2col with in-kernel tap accumulation
        # (extra grid axis over the kh*kw taps) to avoid the k^2 blow-up in
        # HBM read traffic for kernel_size > 1.
        xp = jnp.pad(x, ((0, 0), (0, 0), (pad, pad), (pad, pad)))
        taps = [xp[:, :, i:i + H, j:j + W] for i in range(kh) for j in range(kw)]
        A = jnp.stack(taps, axis=1).reshape(N, K, HW)           # K index = tap*Cin + c
        Wm = jnp.transpose(weight, (0, 2, 3, 1)).reshape(Cout, K)

    # ---- tile selection (lane-dense HW axis; VMEM-safe on v5e/v6e/v7x) ----
    t_hw = min(_round_up(HW, 128), 1024)          # output lane dim >= 128
    HW_pad = _round_up(HW, t_hw)
    if Cout <= 256:
        t_co, Cout_pad = Cout, Cout
    else:
        t_co, Cout_pad = 256, _round_up(Cout, 256)
    if K <= 512:
        t_k, K_pad = K, K
    else:
        t_k, K_pad = 512, _round_up(K, 512)

    if K_pad > K or HW_pad > HW:
        A = jnp.pad(A, ((0, 0), (0, K_pad - K), (0, HW_pad - HW)))
    if Cout_pad > Cout or K_pad > K:
        Wm = jnp.pad(Wm, ((0, Cout_pad - Cout), (0, K_pad - K)))
    b2 = bias.reshape(Cout, 1)
    if Cout_pad > Cout:
        b2 = jnp.pad(b2, ((0, Cout_pad - Cout), (0, 0)))

    grid = (N, Cout_pad // t_co, HW_pad // t_hw, K_pad // t_k)

    flops = 2 * N * Cout_pad * HW_pad * K_pad
    bytes_accessed = 4 * (A.size + Wm.size + b2.size + N * Cout_pad * HW_pad)

    out = pl.pallas_call(
        _conv_mm_kernel,
        out_shape=jax.ShapeDtypeStruct((N, Cout_pad, HW_pad), x.dtype),
        grid_spec=pltpu.PrefetchScalarGridSpec(
            num_scalar_prefetch=0,
            grid=grid,
            in_specs=[
                pl.BlockSpec((t_co, t_k), lambda n, co, hw, k: (co, k)),
                pl.BlockSpec((None, t_k, t_hw), lambda n, co, hw, k: (n, k, hw)),
                pl.BlockSpec((t_co, 1), lambda n, co, hw, k: (co, 0)),
            ],
            out_specs=pl.BlockSpec((None, t_co, t_hw),
                                   lambda n, co, hw, k: (n, co, hw)),
            scratch_shapes=[pltpu.VMEM((t_co, t_hw), jnp.float32)],
        ),
        compiler_params=pltpu.CompilerParams(
            dimension_semantics=("parallel", "parallel", "parallel", "arbitrary"),
            vmem_limit_bytes=32 * 1024 * 1024,
        ),
        cost_estimate=pl.CostEstimate(flops=flops, transcendentals=0,
                                      bytes_accessed=bytes_accessed),
    )(Wm, A, b2)

    # strip padding; output is already NCHW-ordered (N, Cout, H*W)
    return out[:, :Cout, :HW].reshape(N, Cout, H, W)


if __name__ == "__main__":
    key = jax.random.PRNGKey(0)
    k_x, k_w, k_b, k_w3, k_b3 = jax.random.split(key, 5)

    # shapes consistent with the module: batch=2, in_channels=4, out_channels=8,
    # spatial 16x16, kernel_size=1 (module default)
    N, Cin, Cout, H, W = 2, 4, 8, 16, 16
    x = jax.random.normal(k_x, (N, Cin, H, W), dtype=jnp.float32)

    # ---- kernel_size = 1 (module default) ----
    ks = 1
    bound = 1.0 / (Cin * ks * ks) ** 0.5
    weight = jax.random.uniform(k_w, (Cout, Cin, ks, ks), minval=-bound,
                                maxval=bound, dtype=jnp.float32)
    bias = jax.random.uniform(k_b, (Cout,), minval=-bound, maxval=bound,
                              dtype=jnp.float32)
    y = jax.block_until_ready(my_conv2d(x, weight, bias, kernel_size=ks))
    ref = (jnp.einsum("nchw,oc->nohw", x, weight[:, :, 0, 0])
           + bias[None, :, None, None])
    assert y.shape == (N, Cout, H, W)
    assert jnp.allclose(y, ref, atol=1e-5, rtol=1e-5)

    # ---- kernel_size = 3 ("same"-padding path) ----
    ks3 = 3
    bound3 = 1.0 / (Cin * ks3 * ks3) ** 0.5
    w3 = jax.random.uniform(k_w3, (Cout, Cin, ks3, ks3), minval=-bound3,
                            maxval=bound3, dtype=jnp.float32)
    b3 = jax.random.uniform(k_b3, (Cout,), minval=-bound3, maxval=bound3,
                            dtype=jnp.float32)
    y3 = jax.block_until_ready(my_conv2d(x, w3, b3, kernel_size=ks3))
    xp = jnp.pad(x, ((0, 0), (0, 0), (1, 1), (1, 1)))
    ref3 = sum(jnp.einsum("nchw,oc->nohw", xp[:, :, i:i + H, j:j + W], w3[:, :, i, j])
               for i in range(ks3) for j in range(ks3)) + b3[None, :, None, None]
    assert y3.shape == (N, Cout, H, W)
    assert jnp.allclose(y3, ref3, atol=1e-4, rtol=1e-4)

    print("KERNEL_OK")
</pallas_src>

<mosaic_0001>
module attributes {stable_mosaic.version = 11 : i64} {
  func.func @_conv_mm_kernel(%arg0: i32, %arg1: i32, %arg2: i32, %arg3: i32, %arg4: memref<8x4xf32, #tpu.memory_space<vmem>>, %arg5: memref<1x4x256xf32, #tpu.memory_space<vmem>>, %arg6: memref<8x1xf32, #tpu.memory_space<vmem>>, %arg7: memref<1x8x256xf32, #tpu.memory_space<vmem>>, %arg8: memref<8x256xf32, #tpu.memory_space<vmem>>) attributes {dimension_semantics = [#tpu.dimension_semantics<parallel>, #tpu.dimension_semantics<parallel>, #tpu.dimension_semantics<parallel>, #tpu.dimension_semantics<arbitrary>], iteration_bounds = array<i64: 2, 1, 1, 1>, scalar_prefetch = 0 : i64, scratch_operands = 1 : i64, tpu.core_type = #tpu.core_type<tc>, window_params = [{transform_indices = @transform_0, window_bounds = array<i64: 8, 4>}, {transform_indices = @transform_1, window_bounds = array<i64: 1, 4, 256>}, {transform_indices = @transform_2, window_bounds = array<i64: 8, 1>}, {transform_indices = @transform_3, window_bounds = array<i64: 1, 8, 256>}]} {
    %c0_i32 = arith.constant 0 : i32
    %0 = arith.cmpi eq, %arg3, %c0_i32 : i32
    %1 = arith.extui %0 : i1 to i32
    %c0_i32_0 = arith.constant 0 : i32
    %2 = arith.cmpi ne, %1, %c0_i32_0 : i32
    scf.if %2 {
      %cst_11 = arith.constant 0.000000e+00 : f32
      %13 = vector.broadcast %cst_11 : f32 to vector<8x256xf32>
      %c0_12 = arith.constant 0 : index
      %c0_13 = arith.constant 0 : index
      %14 = vector.load %arg8[%c0_12, %c0_13] : memref<8x256xf32, #tpu.memory_space<vmem>>, vector<8x256xf32>
      tpu.vector_store %arg8[%c0_12, %c0_13], %13 {strides = array<i32>} : memref<8x256xf32, #tpu.memory_space<vmem>>, vector<8x256xf32>,
    } else {
    }
    %c0 = arith.constant 0 : index
    %c0_1 = arith.constant 0 : index
    %3 = vector.load %arg8[%c0, %c0_1] : memref<8x256xf32, #tpu.memory_space<vmem>>, vector<8x256xf32>
    %c0_2 = arith.constant 0 : index
    %c0_3 = arith.constant 0 : index
    %4 = vector.load %arg4[%c0_2, %c0_3] : memref<8x4xf32, #tpu.memory_space<vmem>>, vector<8x4xf32>
    %c0_4 = arith.constant 0 : index
    %c0_5 = arith.constant 0 : index
    %c0_6 = arith.constant 0 : index
    %5 = vector.load %arg5[%c0_4, %c0_5, %c0_6] : memref<1x4x256xf32, #tpu.memory_space<vmem>>, vector<1x4x256xf32>
    %6 = vector.shape_cast %5 : vector<1x4x256xf32> to vector<4x256xf32>
    %cst = arith.constant dense<0.000000e+00> : vector<8x256xf32>
    %7 = tpu.matmul %4, %6, %cst {dimension_numbers = #tpu.dot_dimension_numbers<[1], [0], [0], [1], [0, 0, 1, 1], [], []>} : vector<8x4xf32>, vector<4x256xf32>, vector<8x256xf32> -> vector<8x256xf32>
    %8 = arith.addf %3, %7 : vector<8x256xf32>
    %c0_7 = arith.constant 0 : index
    %c0_8 = arith.constant 0 : index
    %9 = vector.load %arg8[%c0_7, %c0_8] : memref<8x256xf32, #tpu.memory_space<vmem>>, vector<8x256xf32>
    tpu.vector_store %arg8[%c0_7, %c0_8], %8 {strides = array<i32>} : memref<8x256xf32, #tpu.memory_space<vmem>>, vector<8x256xf32>,
    %c0_i32_9 = arith.constant 0 : i32
    %10 = arith.cmpi eq, %arg3, %c0_i32_9 : i32
    %11 = arith.extui %10 : i1 to i32
    %c0_i32_10 = arith.constant 0 : i32
    %12 = arith.cmpi ne, %11, %c0_i32_10 : i32
    scf.if %12 {
      %c0_11 = arith.constant 0 : index
      %c0_12 = arith.constant 0 : index
      %13 = vector.load %arg8[%c0_11, %c0_12] : memref<8x256xf32, #tpu.memory_space<vmem>>, vector<8x256xf32>
      %c0_13 = arith.constant 0 : index
      %c0_14 = arith.constant 0 : index
      %14 = vector.load %arg6[%c0_13, %c0_14] : memref<8x1xf32, #tpu.memory_space<vmem>>, vector<8x1xf32>
      %15 = vector.broadcast %14 : vector<8x1xf32> to vector<8x256xf32>
      %16 = arith.addf %13, %15 : vector<8x256xf32>
      %c0_15 = arith.constant 0 : index
      %c0_16 = arith.constant 0 : index
      %c0_17 = arith.constant 0 : index
      %17 = vector.load %arg7[%c0_15, %c0_16, %c0_17] : memref<1x8x256xf32, #tpu.memory_space<vmem>>, vector<1x8x256xf32>
      %18 = vector.shape_cast %17 : vector<1x8x256xf32> to vector<8x256xf32>
      %19 = vector.shape_cast %16 : vector<8x256xf32> to vector<1x8x256xf32>
      tpu.vector_store %arg7[%c0_15, %c0_16, %c0_17], %19 {strides = array<i32>} : memref<1x8x256xf32, #tpu.memory_space<vmem>>, vector<1x8x256xf32>,
    } else {
    }
    return
  }
  func.func @transform_0(%arg0: i32, %arg1: i32, %arg2: i32, %arg3: i32) -> (i32, i32) {
    %c0_i32 = arith.constant 0 : i32
    return %arg1, %arg3 : i32, i32
  }
  func.func @transform_1(%arg0: i32, %arg1: i32, %arg2: i32, %arg3: i32) -> (i32, i32, i32) {
    %c0_i32 = arith.constant 0 : i32
    return %arg0, %arg3, %arg2 : i32, i32, i32
  }
  func.func @transform_2(%arg0: i32, %arg1: i32, %arg2: i32, %arg3: i32) -> (i32, i32) {
    %c0_i32 = arith.constant 0 : i32
    %c0_i32_0 = arith.constant 0 : i32
    return %arg1, %c0_i32 : i32, i32
  }
  func.func @transform_3(%arg0: i32, %arg1: i32, %arg2: i32, %arg3: i32) -> (i32, i32, i32) {
    %c0_i32 = arith.constant 0 : i32
    return %arg0, %arg1, %arg2 : i32, i32, i32
  }
}

</mosaic_0001>

<bundles_post_ra>
// kernel: tpu_custom_call.1
= control target key start
LH: loop header
LB: loop body
LE: loop exit
PB: predicated region body
PF: predicated region fallthrough
CT: control target
= control target key end

     0   :  { %8 = vsyncpa [#allocation4], 0  ;;  %s813_s0 = inlined_call_operand.vmem [shape: f32[8,4], index: 0, kind: input, shape index: {}]   ;;  %s814_s1 = inlined_call_operand.vmem [shape: f32[2,4,256], index: 1, kind: input, shape index: {}]   ;;  %s815_s2 = inlined_call_operand.vmem [shape: f32[8,1], index: 2, kind: input, shape index: {}]   ;;  %s816_s3 = inlined_call_operand.hbm [shape: f32[2,8,256], index: 3, kind: output, shape index: {}]  }
   0x1   :  { %10 = vsyncpa [#allocation4 + $0x1], 0  ;;  %s708_s12 = smov 0   ;;  %s710_s13 = smov 0  }
   0x2   :  { %s712_s14 = smov 0   ;;  %s714_s15 = smov 0  }
   0x3   :  { %s716_s16 = smov 0   ;;  %s718_s17 = smov 0  }
   0x4 LB: > { %s528_s18 = sadd.s32 4294967295, %s683_s17   ;;  %s529_s19 = sadd.s32 4294967294, %s683_s17   ;;  %s683_s17 = sphi %s718_s17, %s16_s17   ;;  %s679_s16 = sphi %s716_s16, %s823_s16   ;;  %s675_s15 = sphi %s714_s15, %s822_s15   ;;  %s671_s14 = sphi %s712_s14, %s821_s14   ;;  %s667_s13 = sphi %s710_s13, %s820_s13   ;;  %s663_s12 = sphi %s708_s12, %s819_s12  }
   0x5   : > { %s42_s20 = sadd.s32 1, %s679_s16  ;;  %s137_s21 = sadd.s32 1, %s671_s14 }
   0x6   : > { %p44_p0 = scmp.ge.s32.totalorder %s42_s20, 2  ;;  %p147_p1 = scmp.ne.s32.totalorder %s671_s14, %s667_s13 }
   0x7   : > { %p148_p2 = scmp.eq.s32.totalorder %s528_s18, 1  ;;  %p153_p3 = scmp.ne.s32.totalorder %s667_s13, %s663_s12 }
   0x8   : > { %s825_s20 = smov (%p44_p0, %s42_s20), 0  ;;  %p154_p5 = scmp.eq.s32.totalorder %s529_s19, 1 }
   0x9   : > { %p748_p4 = por %p148_p2, %p147_p1  ;;  %s130_s23 = ssub.s32 %s679_s16, %s825_s20 }
   0xa   : > { %p534_p6 = scmp.ge.s32.totalorder %s683_s17, 1  ;;  %p135_p7 = scmp.eq.s32.totalorder %s130_s23, 0 }
   0xb   : > { %p755_p8 = por %p154_p5, %p153_p3  ;;  %p206_p9 = scmp.lt.s32.totalorder %s683_s17, 3 }
   0xc   : > { %s761_s25 = scalar_select %p135_p7, %s671_s14, %s137_s21  }
   0xd   : > { %p207_p10 = pnand %p534_p6, %p206_p9 }
   0xe   : > { %p257_p11 = scmp.lt.s32.totalorder (!%p207_p10), %s675_s15, 1  ;;  %s246_s8 = sand.u32 (!%p207_p10), 1, %s667_s13  }
   0xf   : > { %210 = sbr.rel (%p207_p10) target bundleno = 239 (0xef), region = 32  ;;  %s535_s9 = sshll.u32 (!%p207_p10), %s246_s8, 4 }
  0x10   : > { %s547_s10 = sshll.u32 (!%p207_p10), %s675_s15, 8  ;;  %s248_s11 = scalar_lea.vmem (!%p207_p10), [#allocation3], %s535_s9 }
  0x11   : > { %s405_s18 = sshll.u32 (!%p207_p10), %s248_s11, 4  ;;  %s403_s23 = scalar_lea.hbm (!%p207_p10), %s816_s3, %s547_s10  ;;  %s406_s18 = int_to_ptr.vmem [resolvable:$true] %s405_s18 }
  0x12   : > { %s387_s26 = scalar_lea.sflag (!%p207_p10), [#allocation4], %s246_s8  ;;  %s607_s27 = scalar_lea.vmem (!%p207_p10), %s406_s18, 256 }
  0x13   : > { %p608_p12 = scmp.ne.s32.totalorder (!%p207_p10), %s406_s18, %s607_s27 }
  0x14   : > { %v685_v0 = vmov 0.0   ;;  %v686_v1 = vmov 0   ;;  %v376_v2 = vld [vmem:[%s815_s2] sm:$0xff]  ;;  %s258_s28 = scalar_select %p257_p11, %s675_s15, 1  ;;  %vm291_vm0 = vcmask 1043456   ;;  %vm287_vm1 = vcmask 31744  }
  0x15   : > { %360 = vmatprep.mubr.f32.mxu0 %v685_v0  ;;  %605 = vset.pattern.permute.xlu0 %v686_v1  ;;  %v283_v5 = vld [vmem:[%s813_s0] sm:$0xff]  ;;  %p609_p13 = pnand %p608_p12, %p748_p4 }
  0x16   : > { %379 = vperm.xlu0 %605, %v376_v2   ;;  %s546_s29 = sshll.u32 %s258_s28, 3  ;;  %s687_s28 = smov [#allocation3]  }
  0x17   : > { %s268_s5 = scalar_lea.vmem %s814_s1, %s546_s29  ;;  %p610_p0 = pneg %p609_p13 }
  0x18   : > { %v284_v3 = vld [vmem:[%s268_s5] sm:$0xff]  ;;  %s611_s15 = sshll.u32 %s687_s28, 4  ;;  %s612_s15 = int_to_ptr.vmem [resolvable:$false] %s611_s15 }
  0x19   : > { %v286_v4 = vcombine.high %v284_v3, %v284_v3  ;;  %s613_s29 = scalar_lea.vmem %s612_s15, 512  ;;  %p614_p1 = scmp.lt.s32.totalorder %s406_s18, %s612_s15 }
  0x1a   : > { %p615_p2 = scmp.lt.s32.totalorder %s613_s29, %s607_s27 }
  0x1b   : > { %538 = vmatprep.subr.msk.mxu0 %vm291_vm0, %v286_v4 }
  0x1c   : > { %539 = vmatpush1.msk.msra.mxu0 %vm291_vm0, %v284_v3  ;;  %p616_p3 = por %p615_p2, %p614_p1 }
  0x1d   : > { %540 = vmatmul.mubr.msk.f32.vlgmr.msra.gmra.mxu0 %vm287_vm1, %v283_v5 }
  0x1e   : > { %p617_p5 = pnand %p616_p3, %p610_p0 }
  0x91   : > { %v380_v6 = vpop.permute.xlu0 %379 }
  0xdd   : > { %v362_v7 = vpop.f32.mrf.mxu0 }
  0xde   : > { %v382_v8 = vadd.f32 %v380_v6, %v362_v7 }
  0xdf   : > { %v364_v9 = vpop.f32.mrf.mxu0 }
  0xe0   : > { %384 = vst [vmem:[%s248_s11] sm:$0xff] %v382_v8  ;;  %v383_v10 = vadd.f32 %v380_v6, %v364_v9 }
  0xe2   : > { %385 = vst [vmem:[%s248_s11 + $0x8] sm:$0xff] %v383_v10 }
  0xe3   : > { %620 = shalt.err (!%p617_p5)
}
  0xe4   : > { %s621_s30 = scalar_lea.hbm %s403_s23, 256  ;;  %s625_s6 = scalar_lea.hbm %s816_s3, 512 }
  0xe5   : > { %p622_p6 = scmp.ne.s32.totalorder %s403_s23, %s621_s30  ;;  %p626_p10 = scmp.lt.s32.totalorder %s403_s23, %s816_s3 }
  0xe6   : > { %p627_p11 = scmp.lt.s32.totalorder %s625_s6, %s621_s30 }
  0xe7   : > { %p623_p7 = pnand %p622_p6, %p748_p4 }
  0xe8   : > { %p628_p12 = por %p627_p11, %p626_p10 }
  0xe9   : > { %p624_p9 = pneg %p623_p7 }
  0xeb   : > { %p629_p13 = pnand %p628_p12, %p624_p9 }
  0xed   : > { %632 = shalt.err (!%p629_p13)
}
  0xee   : > { %548 = dma.vmem_to_hbm [thread:$0]  (%p748_p4), %s406_s18, 256, %s403_s23, %s387_s26  }
  0xef PF: > { %p554_p0 = scmp.ge.s32.totalorder %s683_s17, 2  ;;  %s417_s9 = sand.u32 1, %s663_s12  }
  0xf0   : > { %s418_s10 = scalar_lea.sflag [#allocation4], %s417_s9 }
  0xf1   : > { %p551_p1 = pnand %p554_p0, %p755_p8 }
  0xf3   : > { %p552_p2 = pneg %p551_p1 }
  0xf5   : > { %658 = dma.done.wait (%p552_p2), %s418_s10, 256  }
  0xf6   : > { %660 = vsyncadd (%p552_p2), %s418_s10, 4294967040  ;;  %s16_s17 = sadd.s32 1, %s683_s17   ;;  %s819_s12 = smov %s667_s13 }
  0xf7   : > { %p13_p3 = scmp.ge.s32.totalorder %s16_s17, 4   ;;  %s820_s13 = smov %s671_s14 }
  0xf8   : > { %s821_s14 = smov %s761_s25  ;;  %s822_s15 = smov %s679_s16 }
  0xf9   : > { %s823_s16 = smov %s825_s20  ;;  %15 = sbr.rel (!%p13_p3) target bundleno = 4 (0x4), region = 81 }
  0xfe   :  { %423 = vsyncpa [#allocation4], 1 }
  0xff   :  { %425 = vsyncpa [#allocation4 + $0x1], 1 }

</bundles_post_ra>
